<compile_context>
chip_gen: v7x
topology: tpu7x:2x2x1
jax: 0.10.0
libtpu: 0.0.40
codegen_flags: <defaults>
</compile_context>

<pallas_src>
import functools
import math

import jax
import jax.numpy as jnp
from jax.experimental import pallas as pl
from jax.experimental.pallas import tpu as pltpu


def _round_up(n, m):
    return ((n + m - 1) // m) * m


def _cluster_margin_loss_kernel(x_ref, tgt_ref, out_ref, *,
                                nearest_centroid_num, batch_size, block_b, ragged):
    """One batch tile: per-row sum of relu(x - t) over the `num` smallest scores."""
    x = x_ref[...].astype(jnp.float32)          # (TB, C) scores
    tgt = tgt_ref[...]                          # (TB, T) int32 target cluster ids
    TB, C = x.shape
    T = tgt.shape[1]

    # ---- fused target score: exactly PyTorch's max(mask + input, dim=1) ----
    lane = jax.lax.broadcasted_iota(jnp.int32, (TB, C), 1)
    is_target = lane == tgt[:, 0:1]
    for j in range(1, T):                       # T is tiny & static
        is_target = jnp.logical_or(is_target, lane == tgt[:, j:j + 1])
    t = jnp.max(jnp.where(is_target, x, x - 100000.0), axis=1, keepdims=True)  # (TB, 1)

    # ---- shifted domain: relu(x - t) == max(y, 0) with y = x - t ----
    y = x - t
    # Exact f32 row-sum on the XLU (MXU default precision would truncate to bf16).
    total = jnp.sum(jnp.maximum(y, 0.0), axis=1, keepdims=True)                 # (TB, 1)

    # Subtract contribution of the (ncn - 1) largest entries per row (tie-safe),
    # leaving the sum over the `num` smallest entries == topk(largest=False) sum.
    ones_col = jnp.ones((C, 1), jnp.float32)    # MXU tie-count reduction vector
    remaining = jnp.full((TB, 1), float(nearest_centroid_num - 1), jnp.float32)
    neg_inf = jnp.float32(-jnp.inf)
    work = y
    for _ in range(nearest_centroid_num - 1):   # small, static unroll
        m = jnp.max(work, axis=1, keepdims=True)                     # XLU reduce
        is_m = work == m                                             # VPU
        cnt = jnp.dot(is_m.astype(jnp.float32), ones_col,            # MXU (idle), exact
                      preferred_element_type=jnp.float32)
        take = jnp.minimum(cnt, remaining)                           # tie-safe count
        total = total - take * jnp.maximum(m, 0.0)
        remaining = remaining - take
        work = jnp.where(is_m, neg_inf, work)

    if ragged:
        # Last tile may read past the end of the batch: zero those rows' contribution.
        row = pl.program_id(0) * block_b + jax.lax.broadcasted_iota(
            jnp.int32, (TB, 1), 0)
        total = jnp.where(row < batch_size, total, 0.0)

    out_ref[...] = total                                             # (TB, 1)


def cluster_margin_loss(x, target, *, nearest_centroid_num, cluster_num, block_b=1024):
    B, C = x.shape
    T = target.shape[1]
    assert C == cluster_num
    assert cluster_num - nearest_centroid_num + 1 >= 1, (
        "cluster_num must be >= nearest_centroid_num")

    x = x.astype(jnp.float32)
    target = target.astype(jnp.int32)

    # Batch tile: multiple of 8 sublanes, as large as block_b, but split so the grid
    # has >= 2 steps -> the "parallel" axis shards tiles across both v7x TensorCores.
    TB = max(8, min(block_b, _round_up(math.ceil(B / 2), 8)))
    n_tiles = math.ceil(B / TB)                 # ragged last tile handled in-kernel
    ragged = (B % TB) != 0

    kernel = functools.partial(
        _cluster_margin_loss_kernel,
        nearest_centroid_num=nearest_centroid_num,
        batch_size=B, block_b=TB, ragged=ragged,
    )

    per_row = pl.pallas_call(
        kernel,
        out_shape=jax.ShapeDtypeStruct((B, 1), jnp.float32),
        grid=(n_tiles,),
        in_specs=[
            pl.BlockSpec((TB, C), lambda i: (i, 0)),   # (TB, 128) f32 score tile
            pl.BlockSpec((TB, T), lambda i: (i, 0)),   # (TB, T) int32 target ids (tiny)
        ],
        out_specs=pl.BlockSpec((TB, 1), lambda i: (i, 0)),
        compiler_params=pltpu.CompilerParams(
            dimension_semantics=("parallel",),         # independent tiles: megacore-friendly
        ),
    )(x, target)

    # Final tiny reduction + normalization with the GLOBAL batch size.
    return jnp.sum(per_row) / (B * 500.0)


def _reference_loss(x, target, *, nearest_centroid_num, cluster_num):
    # Pure-JAX transcription of the PyTorch forward (for verification only).
    B, C = x.shape
    num = cluster_num - nearest_centroid_num + 1
    bottom = jnp.sort(x, axis=1)[:, :num]                               # smallest `num`
    mask = jnp.full((B, C), -100000.0, jnp.float32)
    mask = mask.at[jnp.arange(B)[:, None], target].set(0.0)
    t = jnp.max(mask + x, axis=1, keepdims=True)
    return jnp.sum(jnp.maximum(bottom - t, 0.0)) / B / 500.0


if __name__ == "__main__":
    # Module "parameters" (no learnable weights in this module).
    nearest_centroid_num = 4
    cluster_num = 128

    key = jax.random.PRNGKey(0)

    # --- Small demo case: batch=2, 2 target clusters per row (single ragged tile) ---
    kx, kt, key = jax.random.split(key, 3)
    x = jax.random.normal(kx, (2, cluster_num), dtype=jnp.float32)
    target = jax.random.randint(kt, (2, 2), 0, cluster_num, dtype=jnp.int32)
    loss = jax.block_until_ready(cluster_margin_loss(
        x, target, nearest_centroid_num=nearest_centroid_num, cluster_num=cluster_num))
    ref = _reference_loss(
        x, target, nearest_centroid_num=nearest_centroid_num, cluster_num=cluster_num)
    assert jnp.allclose(loss, ref, rtol=1e-4, atol=1e-5), (loss, ref)

    # --- Multi-tile grid + ragged last tile + many ties ---
    kx2, kt2, key = jax.random.split(key, 3)
    x2 = jax.random.normal(kx2, (300, cluster_num), dtype=jnp.float32)
    x2 = jnp.round(x2 * 10.0) / 10.0          # quantize -> many duplicate scores (ties)
    target2 = jax.random.randint(kt2, (300, 3), 0, cluster_num, dtype=jnp.int32)
    loss2 = jax.block_until_ready(cluster_margin_loss(
        x2, target2, nearest_centroid_num=nearest_centroid_num, cluster_num=cluster_num))
    ref2 = _reference_loss(
        x2, target2, nearest_centroid_num=nearest_centroid_num, cluster_num=cluster_num)
    assert jnp.allclose(loss2, ref2, rtol=1e-4, atol=1e-5), (loss2, ref2)

    # --- Evenly divisible batch (non-ragged path), 2 parallel tiles ---
    kx3, kt3, key = jax.random.split(key, 3)
    x3 = jax.random.normal(kx3, (512, cluster_num), dtype=jnp.float32)
    target3 = jax.random.randint(kt3, (512, 2), 0, cluster_num, dtype=jnp.int32)
    loss3 = jax.block_until_ready(cluster_margin_loss(
        x3, target3, nearest_centroid_num=nearest_centroid_num, cluster_num=cluster_num))
    ref3 = _reference_loss(
        x3, target3, nearest_centroid_num=nearest_centroid_num, cluster_num=cluster_num)
    assert jnp.allclose(loss3, ref3, rtol=1e-4, atol=1e-5), (loss3, ref3)

    print("KERNEL_OK")
</pallas_src>

<mosaic_0001>
module attributes {stable_mosaic.version = 11 : i64} {
  func.func @_cluster_margin_loss_kernel(%arg0: i32, %arg1: memref<8x128xf32, #tpu.memory_space<vmem>>, %arg2: memref<8x2xi32, #tpu.memory_space<vmem>>, %arg3: memref<8x1xf32, #tpu.memory_space<vmem>>) attributes {dimension_semantics = [#tpu.dimension_semantics<parallel>], iteration_bounds = array<i64: 1>, scalar_prefetch = 0 : i64, scratch_operands = 0 : i64, tpu.core_type = #tpu.core_type<tc>, window_params = [{transform_indices = @transform_0, window_bounds = array<i64: 8, 128>}, {transform_indices = @transform_1, window_bounds = array<i64: 8, 2>}, {transform_indices = @transform_2, window_bounds = array<i64: 8, 1>}]} {
    %c0 = arith.constant 0 : index
    %c0_0 = arith.constant 0 : index
    %0 = vector.load %arg1[%c0, %c0_0] : memref<8x128xf32, #tpu.memory_space<vmem>>, vector<8x128xf32>
    %c0_1 = arith.constant 0 : index
    %c0_2 = arith.constant 0 : index
    %1 = vector.load %arg2[%c0_1, %c0_2] : memref<8x2xi32, #tpu.memory_space<vmem>>, vector<8x2xi32>
    %2 = tpu.iota {dimensions = array<i32: 1>} : vector<8x128xi32>
    %3 = vector.extract_strided_slice %1 {offsets = [0, 0], sizes = [8, 1], strides = [1, 1]} : vector<8x2xi32> to vector<8x1xi32>
    %4 = vector.broadcast %3 : vector<8x1xi32> to vector<8x128xi32>
    %5 = arith.cmpi eq, %2, %4 : vector<8x128xi32>
    %6 = vector.extract_strided_slice %1 {offsets = [0, 1], sizes = [8, 1], strides = [1, 1]} : vector<8x2xi32> to vector<8x1xi32>
    %7 = vector.broadcast %6 : vector<8x1xi32> to vector<8x128xi32>
    %8 = arith.cmpi eq, %2, %7 : vector<8x128xi32>
    %9 = arith.ori %5, %8 : vector<8x128xi1>
    %cst = arith.constant 1.000000e+05 : f32
    %10 = vector.broadcast %cst : f32 to vector<8x128xf32>
    %11 = arith.subf %0, %10 : vector<8x128xf32>
    %12 = arith.select %9, %0, %11 : vector<8x128xi1>, vector<8x128xf32>
    %cst_3 = arith.constant dense<0xFF800000> : vector<8xf32>
    %13 = vector.multi_reduction <maximumf>, %12, %cst_3 [1] : vector<8x128xf32> to vector<8xf32>
    %14 = vector.shape_cast %13 : vector<8xf32> to vector<8x1xf32>
    %15 = vector.broadcast %14 : vector<8x1xf32> to vector<8x128xf32>
    %16 = arith.subf %0, %15 : vector<8x128xf32>
    %cst_4 = arith.constant 0.000000e+00 : f32
    %17 = vector.broadcast %cst_4 : f32 to vector<8x128xf32>
    %18 = arith.maximumf %16, %17 : vector<8x128xf32>
    %cst_5 = arith.constant dense<0.000000e+00> : vector<8xf32>
    %19 = vector.multi_reduction <add>, %18, %cst_5 [1] : vector<8x128xf32> to vector<8xf32>
    %20 = vector.shape_cast %19 : vector<8xf32> to vector<8x1xf32>
    %cst_6 = arith.constant 1.000000e+00 : f32
    %21 = vector.broadcast %cst_6 : f32 to vector<128x1xf32>
    %cst_7 = arith.constant 3.000000e+00 : f32
    %22 = vector.broadcast %cst_7 : f32 to vector<8x1xf32>
    %cst_8 = arith.constant dense<0xFF800000> : vector<8xf32>
    %23 = vector.multi_reduction <maximumf>, %16, %cst_8 [1] : vector<8x128xf32> to vector<8xf32>
    %24 = vector.shape_cast %23 : vector<8xf32> to vector<8x1xf32>
    %25 = vector.broadcast %24 : vector<8x1xf32> to vector<8x128xf32>
    %26 = arith.cmpf oeq, %16, %25 : vector<8x128xf32>
    %27 = arith.extui %26 : vector<8x128xi1> to vector<8x128xi32>
    %28 = arith.sitofp %27 : vector<8x128xi32> to vector<8x128xf32>
    %cst_9 = arith.constant dense<0.000000e+00> : vector<8x1xf32>
    %29 = tpu.matmul %28, %21, %cst_9 {dimension_numbers = #tpu.dot_dimension_numbers<[1], [0], [0], [1], [0, 0, 1, 1], [], []>} : vector<8x128xf32>, vector<128x1xf32>, vector<8x1xf32> -> vector<8x1xf32>
    %30 = arith.minimumf %29, %22 : vector<8x1xf32>
    %cst_10 = arith.constant 0.000000e+00 : f32
    %31 = vector.broadcast %cst_10 : f32 to vector<8x1xf32>
    %32 = arith.maximumf %24, %31 : vector<8x1xf32>
    %33 = arith.mulf %30, %32 : vector<8x1xf32>
    %34 = arith.subf %20, %33 : vector<8x1xf32>
    %35 = arith.subf %22, %30 : vector<8x1xf32>
    %cst_11 = arith.constant 0xFF800000 : f32
    %36 = vector.broadcast %cst_11 : f32 to vector<8x128xf32>
    %37 = arith.select %26, %36, %16 : vector<8x128xi1>, vector<8x128xf32>
    %cst_12 = arith.constant dense<0xFF800000> : vector<8xf32>
    %38 = vector.multi_reduction <maximumf>, %37, %cst_12 [1] : vector<8x128xf32> to vector<8xf32>
    %39 = vector.shape_cast %38 : vector<8xf32> to vector<8x1xf32>
    %40 = vector.broadcast %39 : vector<8x1xf32> to vector<8x128xf32>
    %41 = arith.cmpf oeq, %37, %40 : vector<8x128xf32>
    %42 = arith.extui %41 : vector<8x128xi1> to vector<8x128xi32>
    %43 = arith.sitofp %42 : vector<8x128xi32> to vector<8x128xf32>
    %cst_13 = arith.constant dense<0.000000e+00> : vector<8x1xf32>
    %44 = tpu.matmul %43, %21, %cst_13 {dimension_numbers = #tpu.dot_dimension_numbers<[1], [0], [0], [1], [0, 0, 1, 1], [], []>} : vector<8x128xf32>, vector<128x1xf32>, vector<8x1xf32> -> vector<8x1xf32>
    %45 = arith.minimumf %44, %35 : vector<8x1xf32>
    %cst_14 = arith.constant 0.000000e+00 : f32
    %46 = vector.broadcast %cst_14 : f32 to vector<8x1xf32>
    %47 = arith.maximumf %39, %46 : vector<8x1xf32>
    %48 = arith.mulf %45, %47 : vector<8x1xf32>
    %49 = arith.subf %34, %48 : vector<8x1xf32>
    %50 = arith.subf %35, %45 : vector<8x1xf32>
    %cst_15 = arith.constant 0xFF800000 : f32
    %51 = vector.broadcast %cst_15 : f32 to vector<8x128xf32>
    %52 = arith.select %41, %51, %37 : vector<8x128xi1>, vector<8x128xf32>
    %cst_16 = arith.constant dense<0xFF800000> : vector<8xf32>
    %53 = vector.multi_reduction <maximumf>, %52, %cst_16 [1] : vector<8x128xf32> to vector<8xf32>
    %54 = vector.shape_cast %53 : vector<8xf32> to vector<8x1xf32>
    %55 = vector.broadcast %54 : vector<8x1xf32> to vector<8x128xf32>
    %56 = arith.cmpf oeq, %52, %55 : vector<8x128xf32>
    %57 = arith.extui %56 : vector<8x128xi1> to vector<8x128xi32>
    %58 = arith.sitofp %57 : vector<8x128xi32> to vector<8x128xf32>
    %cst_17 = arith.constant dense<0.000000e+00> : vector<8x1xf32>
    %59 = tpu.matmul %58, %21, %cst_17 {dimension_numbers = #tpu.dot_dimension_numbers<[1], [0], [0], [1], [0, 0, 1, 1], [], []>} : vector<8x128xf32>, vector<128x1xf32>, vector<8x1xf32> -> vector<8x1xf32>
    %60 = arith.minimumf %59, %50 : vector<8x1xf32>
    %cst_18 = arith.constant 0.000000e+00 : f32
    %61 = vector.broadcast %cst_18 : f32 to vector<8x1xf32>
    %62 = arith.maximumf %54, %61 : vector<8x1xf32>
    %63 = arith.mulf %60, %62 : vector<8x1xf32>
    %64 = arith.subf %49, %63 : vector<8x1xf32>
    %c8_i32 = arith.constant 8 : i32
    %65 = arith.muli %arg0, %c8_i32 : i32
    %66 = tpu.iota {dimensions = array<i32: 0>} : vector<8x1xi32>
    %67 = vector.broadcast %65 : i32 to vector<8x1xi32>
    %68 = arith.addi %67, %66 : vector<8x1xi32>
    %c2_i32 = arith.constant 2 : i32
    %69 = vector.broadcast %c2_i32 : i32 to vector<8x1xi32>
    %70 = arith.cmpi slt, %68, %69 : vector<8x1xi32>
    %cst_19 = arith.constant 0.000000e+00 : f32
    %71 = vector.broadcast %cst_19 : f32 to vector<8x1xf32>
    %72 = arith.select %70, %64, %71 : vector<8x1xi1>, vector<8x1xf32>
    %c0_20 = arith.constant 0 : index
    %c0_21 = arith.constant 0 : index
    %73 = vector.load %arg3[%c0_20, %c0_21] : memref<8x1xf32, #tpu.memory_space<vmem>>, vector<8x1xf32>
    tpu.vector_store %arg3[%c0_20, %c0_21], %72 {strides = array<i32>} : memref<8x1xf32, #tpu.memory_space<vmem>>, vector<8x1xf32>,
    return
  }
  func.func @transform_0(%arg0: i32) -> (i32, i32) {
    %c0_i32 = arith.constant 0 : i32
    %c0_i32_0 = arith.constant 0 : i32
    return %arg0, %c0_i32 : i32, i32
  }
  func.func @transform_1(%arg0: i32) -> (i32, i32) {
    %c0_i32 = arith.constant 0 : i32
    %c0_i32_0 = arith.constant 0 : i32
    return %arg0, %c0_i32 : i32, i32
  }
  func.func @transform_2(%arg0: i32) -> (i32, i32) {
    %c0_i32 = arith.constant 0 : i32
    %c0_i32_0 = arith.constant 0 : i32
    return %arg0, %c0_i32 : i32, i32
  }
}

</mosaic_0001>

<bundles_post_ra>
// kernel: tpu_custom_call.1
= control target key start
LH: loop header
LB: loop body
LE: loop exit
PB: predicated region body
PF: predicated region fallthrough
CT: control target
= control target key end

     0   :  { %7 = vsyncpa [#allocation3], 0  ;;  %s652_s0 = inlined_call_operand.hbm [shape: f32[2,128], index: 0, kind: input, shape index: {}]   ;;  %s653_s1 = inlined_call_operand.vmem [shape: s32[2,2], index: 1, kind: input, shape index: {}]   ;;  %s654_s2 = inlined_call_operand.vmem [shape: f32[2,1], index: 2, kind: output, shape index: {}]  }
   0x1   :  { %12 = vsyncadd [#allocation3], 96  ;;  %s583_s9 = smov [#allocation2]   ;;  %s559_s13 = scalar_lea.hbm %s652_s0, 32 }
   0x2   :  { %s13_s10 = sshll.u32 %s583_s9, 4  ;;  %p560_p0 = scmp.ne.s32.totalorder %s652_s0, %s559_s13  ;;  %s14_s10 = int_to_ptr.vmem [resolvable:$true] %s13_s10 }
   0x3   :  { %p563_p1 = scmp.lt.u32.totalorder %s559_s13, %s652_s0 }
   0x5   :  { %p565_p2 = pnand %p563_p1, %p560_p0 }
   0x7   :  { %568 = shalt.err (!%p565_p2)
}
   0x8   :  { %s569_s18 = scalar_lea.vmem %s14_s10, 32  ;;  %s573_s19 = scalar_lea.vmem %s14_s10, 128 }
   0x9   :  { %p570_p3 = scmp.ne.s32.totalorder %s14_s10, %s569_s18  ;;  %p574_p4 = scmp.lt.s32.totalorder %s14_s10, %s14_s10 }
   0xa   :  { %p575_p5 = scmp.lt.s32.totalorder %s573_s19, %s569_s18 }
   0xc   :  { %p576_p6 = por %p575_p5, %p574_p4 }
   0xe   :  { %p577_p7 = pnand %p576_p6, %p570_p3 }
  0x10   :  { %580 = shalt.err (!%p577_p7)
}
  0x11   :  { %s584_s20 = smov 32   ;;  %s585_s21 = smov 2  }
  0x12   :  { %19 = dma.hbm_to_vmem [thread:$0]  %s652_s0, 32, %s14_s10, [#allocation3], %s584_s20, %s584_s20, %s585_s21  }
  0x13   :  { %581 = dma.done.wait [#allocation3], 128  }
  0x14   :  { %582 = vsyncadd [#allocation3], 4294967168  ;;  %v586_v0 = vmov 0   ;;  %v26_v1 = vld [vmem:[%s653_s1] sm:$0xff]  ;;  %v587_v2 = vmov 1   ;;  %v27_v3 = vlaneseq  ;;  %v588_v10 = vmov 0.0|0.0  }
  0x15   :  { %557 = vset.pattern.permute.xlu0 %v586_v0  ;;  %v25_v5 = vld [vmem:[#allocation2] sm:$0xff]  ;;  %499 = vmatprep.subr.bf16.mxu0 %v588_v10  ;;  %v589_v11 = vmov 1.0|1.0   ;;  %vm590_vm3 = vmmov 0   ;;  %v591_v14 = vmov 0.0   ;;  %v592_v16 = vmov 1.0  }
  0x16   :  { %30 = vperm.xlu0 %557, %v26_v1   ;;  %v28_v6 = vand.u32 127, %v27_v3  ;;  %v336_v7 = vadd.f32 -100000.0, %v25_v5  ;;  %515 = vmatprep.subr.bf16.mxu1 %v588_v10  ;;  %v289_v37 = vshrl.u32 %v27_v3, 7  ;;  %vm294_vm8 = vcmask 7168  }
  0x17   :  { %500 = vmatpush3.bf16.msra.mxu0 %v589_v11  ;;  %516 = vmatpush3.bf16.msra.mxu1 %v589_v11 }
  0x18   :  { %501 = vmatprep.subr.bf16.mxu0 %v588_v10  ;;  %517 = vmatprep.subr.bf16.mxu1 %v588_v10  ;;  %vm292_vm7 = vcmp.lt.s32.totalorder %v289_v37, 2 }
  0x19   :  { %426 = vmatprep.mubr.msk.f32.mxu0 %vm590_vm3, %v591_v14  ;;  %461 = vmatprep.mubr.msk.f32.mxu1 %vm590_vm3, %v591_v14 }
  0x1a   :  { %558 = vset.pattern.permute.xlu0 %v587_v2 }
  0x1b   :  { %34 = vperm.xlu0 %558, %v26_v1   ;;  %502 = vmatpush3.bf16.msra.mxu0 %v589_v11 }
  0x1c   :  { %518 = vmatpush3.bf16.msra.mxu1 %v589_v11  ;;  %503 = vmatprep.subr.bf16.mxu0 %v588_v10 }
  0x1d   :  { %519 = vmatprep.subr.bf16.mxu1 %v588_v10 }
  0x1f   :  { %504 = vmatpush3.bf16.msra.mxu0 %v589_v11 }
  0x20   :  { %520 = vmatpush3.bf16.msra.mxu1 %v589_v11  ;;  %505 = vmatprep.subr.bf16.mxu0 %v588_v10 }
  0x21   :  { %521 = vmatprep.subr.bf16.mxu1 %v588_v10 }
  0x23   :  { %506 = vmatpush3.bf16.msra.mxu0 %v589_v11 }
  0x24   :  { %522 = vmatpush3.bf16.msra.mxu1 %v589_v11  ;;  %507 = vmatprep.subr.bf16.mxu0 %v588_v10 }
  0x25   :  { %523 = vmatprep.subr.bf16.mxu1 %v588_v10 }
  0x27   :  { %508 = vmatpush3.bf16.msra.mxu0 %v589_v11 }
  0x28   :  { %524 = vmatpush3.bf16.msra.mxu1 %v589_v11  ;;  %509 = vmatprep.subr.bf16.mxu0 %v588_v10 }
  0x29   :  { %525 = vmatprep.subr.bf16.mxu1 %v588_v10 }
  0x2b   :  { %510 = vmatpush3.bf16.msra.mxu0 %v589_v11 }
  0x2c   :  { %526 = vmatpush3.bf16.msra.mxu1 %v589_v11  ;;  %511 = vmatprep.subr.bf16.mxu0 %v588_v10 }
  0x2d   :  { %527 = vmatprep.subr.bf16.mxu1 %v588_v10 }
  0x2f   :  { %512 = vmatpush3.bf16.msra.mxu0 %v589_v11 }
  0x30   :  { %528 = vmatpush3.bf16.msra.mxu1 %v589_v11  ;;  %513 = vmatprep.subr.bf16.mxu0 %v588_v10 }
  0x31   :  { %529 = vmatprep.subr.bf16.mxu1 %v588_v10 }
  0x33   :  { %514 = vmatpush3.bf16.msra.mxu0 %v589_v11 }
  0x34   :  { %530 = vmatpush3.bf16.msra.mxu1 %v589_v11  ;;  %531 = vmatprep.subr.bf16.mxu0 %v588_v10 }
  0x95   :  { %v31_v4 = vpop.permute.xlu0 %30 }
  0x96   :  { %vm32_vm0 = vcmp.eq.s32.totalorder %v28_v6, %v31_v4 }
  0x9a   :  { %v35_v8 = vpop.permute.xlu0 %34 }
  0x9b   :  { %vm36_vm1 = vcmp.eq.s32.totalorder %v28_v6, %v35_v8 }
  0x9c   :  { %vm37_vm2 = vmor %vm32_vm0, %vm36_vm1 }
  0x9d   :  { %v39_v9 = vsel %vm37_vm2, %v25_v5, %v336_v7 }
  0x9e   :  { %40 = vmax.xlane.f32.xlu1 %v39_v9 }
 0x12b   :  { %v41_v12 = vpop.xlane.xlu1 %40 }
 0x12c   :  { %v42_v13 = vsub.f32 %v25_v5, %v41_v12 }
 0x12e   :  { %46 = vmax.xlane.f32.xlu1 %v42_v13  ;;  %v43_v18 = vmax.f32 %v42_v13, 0.0 }
 0x1bb   :  { %v47_v15 = vpop.xlane.xlu1 %46 }
 0x1bc   :  { %vm48_vm4 = vcmp.eq.f32.partialorder %v42_v13, %v47_v15  ;;  %v122_v25 = vmax.f32 %v47_v15, 0.0 }
 0x1bd   :  { %427 = vmatmul.mubr.msk.f32.vlgmr.msra.gmra.mrb[0].mxu0 %vm48_vm4, %v592_v16  ;;  %v126_v17 = vsel %vm48_vm4, -inf, %v42_v13 }
 0x1be   :  { %127 = vmax.xlane.f32.xlu1 %v126_v17  ;;  %532 = vmatpush3.bf16.msra.mxu0 %v589_v11 }
 0x1bf   :  { %533 = vmatprep.subr.bf16.mxu0 %v588_v10  ;;  %496 = vmatprep.mubr.msk.f32.mxu0 %vm590_vm3, %v591_v14 }
 0x1c2   :  { %44 = vadd.xlane.f32.xlu1 %v43_v18  ;;  %534 = vmatpush3.bf16.msra.mxu0 %v589_v11 }
 0x1c3   :  { %535 = vmatprep.subr.bf16.mxu0 %v588_v10 }
 0x1c6   :  { %536 = vmatpush3.bf16.msra.mxu0 %v589_v11 }
 0x1c7   :  { %537 = vmatprep.subr.bf16.mxu0 %v588_v10 }
 0x1ca   :  { %538 = vmatpush3.bf16.msra.mxu0 %v589_v11 }
 0x1cb   :  { %539 = vmatprep.subr.bf16.mxu0 %v588_v10 }
 0x1ce   :  { %540 = vmatpush3.bf16.msra.mxu0 %v589_v11 }
 0x1cf   :  { %541 = vmatprep.subr.bf16.mxu0 %v588_v10 }
 0x1d2   :  { %542 = vmatpush3.bf16.msra.mxu0 %v589_v11 }
 0x1d3   :  { %543 = vmatprep.subr.bf16.mxu0 %v588_v10 }
 0x1d6   :  { %544 = vmatpush3.bf16.msra.mxu0 %v589_v11 }
 0x1d7   :  { %545 = vmatprep.subr.bf16.mxu0 %v588_v10 }
 0x1da   :  { %546 = vmatpush3.bf16.msra.mxu0 %v589_v11 }
 0x24b   :  { %v128_v19 = vpop.xlane.xlu1 %127 }
 0x24c   :  { %vm129_vm5 = vcmp.eq.f32.partialorder %v126_v17, %v128_v19  ;;  %v203_v29 = vmax.f32 %v128_v19, 0.0 }
 0x24d   :  { %462 = vmatmul.mubr.msk.f32.vlgmr.msra.gmra.mrb[0].mxu1 %vm129_vm5, %v592_v16  ;;  %v207_v20 = vsel %vm129_vm5, -inf, %v126_v17 }
 0x24e   :  { %208 = vmax.xlane.f32.xlu0 %v207_v20 }
 0x24f   :  { %v45_v32 = vpop.xlane.xlu1 %44 }
 0x290   :  { %v117_v21 = vpop.f32.mrb[0].mxu0 }
 0x291   :  { %v428_v22 = vpop.f32.mrb[1].mxu0  ;;  %v121_v24 = vmin.f32 %v117_v21, 3.0 }
 0x293   :  { %v123_v26 = vmul.f32 %v122_v25, %v121_v24  ;;  %v125_v27 = vsub.f32 3.0, %v121_v24 }
 0x295   :  { %v124_v33 = vsub.f32 %v45_v32, %v123_v26 }
 0x2db   :  { %v209_v23 = vpop.xlane.xlu0 %208 }
 0x2dc   :  { %vm210_vm6 = vcmp.eq.f32.partialorder %v207_v20, %v209_v23  ;;  %v284_v39 = vmax.f32 %v209_v23, 0.0 }
 0x2dd   :  { %497 = vmatmul.mubr.msk.f32.vlgmr.msra.gmra.mrb[2].mxu0 %vm210_vm6, %v592_v16 }
 0x320   :  { %v198_v28 = vpop.f32.mrb[0].mxu1 }
 0x321   :  { %v202_v30 = vmin.f32 %v198_v28, %v125_v27  ;;  %v463_v31 = vpop.f32.mrb[1].mxu1 }
 0x323   :  { %v204_v34 = vmul.f32 %v203_v29, %v202_v30  ;;  %v206_v35 = vsub.f32 %v125_v27, %v202_v30 }
 0x325   :  { %v205_v36 = vsub.f32 %v124_v33, %v204_v34 }
 0x3b0   :  { %v279_v38 = vpop.f32.mrb[2].mxu0 }
 0x3b1   :  { %v283_v40 = vmin.f32 %v279_v38, %v206_v35  ;;  %v498_v41 = vpop.f32.mrb[3].mxu0 }
 0x3b3   :  { %v285_v42 = vmul.f32 %v284_v39, %v283_v40 }
 0x3b5   :  { %v286_v43 = vsub.f32 %v205_v36, %v285_v42 }
 0x3b7   :  { %v293_v44 = vsel %vm292_vm7, %v286_v43, 0.0 }
 0x3b8   :  { %295 = vst.msk [vmem:[#allocation4] sm:$0xff] %vm294_vm8, %v293_v44 }
 0x3bf   :  { %v313_v45 = vld [vmem:[#allocation4] sm:$0x3] }
 0x3c0   :  { %314 = vst [vmem:[%s654_s2] sm:$0x3] %v313_v45 }
 0x3c1   :  { %331 = vsyncpa [#allocation3], 1 }

</bundles_post_ra>
